<compile_context>
chip_gen: v6e
topology: v6e:2x2x1
jax: 0.10.0
libtpu: 0.0.40
codegen_flags: <defaults>
</compile_context>

<pallas_src>
import functools

import jax
import jax.numpy as jnp
from jax.experimental import pallas as pl
from jax.experimental.pallas import tpu as pltpu

IN_LANES = 128                 # packed input slab width (lane-dense)
OUT_LANES = 128                # fused output width (lane-dense)
BIAS_LANE = IN_LANES - 1       # constant-1 lane in the input slab


def _round_up(n, m):
    return ((n + m - 1) // m) * m


# ----------------------------- Pallas kernel -----------------------------

def naf_kernel(slab_ref, w1_ref, w2_ref, wh_ref, out_ref, *,
               state_size, action_size, n_tril):
    S, A, T = state_size, action_size, n_tril
    B, W = out_ref.shape

    slab = slab_ref[...]                                  # f32; action/eps read at full precision
    x16 = slab.astype(jnp.bfloat16)                       # bf16 MXU operand (action/eps lanes hit zero rows)

    # Biases are folded into the weights: slab bias lane = 1 feeds b1, and a
    # constant-1 hidden column propagates b2 / bh through the next two layers.
    h1 = jnp.maximum(
        jnp.dot(x16, w1_ref[...], preferred_element_type=jnp.float32), 0.0)
    h2 = jnp.maximum(
        jnp.dot(h1.astype(jnp.bfloat16), w2_ref[...],
                preferred_element_type=jnp.float32), 0.0)
    heads = jnp.dot(h2.astype(jnp.bfloat16), wh_ref[...],
                    preferred_element_type=jnp.float32)   # (B, 128) lane-dense

    col = jax.lax.broadcasted_iota(jnp.int32, (B, W), 1)
    # One tanh pass over the whole fused vreg; V lane (and the zero pad) stays raw.
    fused = jnp.where(col < A + T, jnp.tanh(heads), heads)

    V = fused[:, A + T:A + T + 1]                         # (B, 1)

    # P = L * L^T (elementwise, as written in the torch module) is diagonal:
    # P[i,i] = exp(2 * d_i)  ->  closed-form Q and MVN(mu, inv(P)) sample.
    q_quad = jnp.zeros((B, 1), jnp.float32)
    sampled_cols = []
    for i in range(A):                                    # A is tiny & static (=2)
        dc = A + (i + 1) * (i + 2) // 2 - 1               # lane of i-th diagonal entry
        d_i = fused[:, dc:dc + 1]                         # (B, 1)
        mu_i = fused[:, i:i + 1]                          # (B, 1)
        t_i = jnp.exp(d_i)                                # single EUP exp per action dim
        diff_i = slab[:, S + i:S + i + 1] - mu_i          # action lane from the slab
        q_quad = q_quad + (t_i * t_i) * (diff_i * diff_i)           # exp(2d) = t*t
        s_i = mu_i + slab[:, S + A + i:S + A + i + 1] * pl.reciprocal(t_i, approx=True)
        sampled_cols.append(jnp.clip(s_i, -1.0, 1.0))
    q = -0.5 * q_quad + V                                 # (B, 1)

    # Pack [mu | entries | V | Q | sampled | zeros] -> ONE unmasked 128-lane store.
    result = jnp.where(col < A + T + 1, fused, 0.0)
    result = jnp.where(col == A + T + 1, q, result)
    for i in range(A):
        result = jnp.where(col == A + T + 2 + i, sampled_cols[i], result)
    out_ref[...] = result


# ------------------------------ wrappers ----------------------------------

def pack_slab(x, action, eps, state_size, action_size):
    """Wrapper-side packing: one lane-dense (B, 128) slab replaces 3 tiny inputs."""
    S, A = state_size, action_size
    B = x.shape[0]
    slab = jnp.zeros((B, IN_LANES), jnp.float32)
    slab = slab.at[:, :S].set(x.astype(jnp.float32))
    slab = slab.at[:, S:S + A].set(action.astype(jnp.float32))
    slab = slab.at[:, S + A:S + 2 * A].set(eps.astype(jnp.float32))
    slab = slab.at[:, BIAS_LANE].set(1.0)
    return slab


def naf_pallas_call(slab, params, *, state_size, action_size, n_tril, block_b=512):
    B = slab.shape[0]
    w1, w2, wh = params["w1"], params["w2"], params["wh"]
    HP = w2.shape[0]

    # Batch tiling: largest tile up to block_b rows (>=512 keeps the ~0.35us/step
    # overhead negligible); "parallel" lets v7x's 2 TensorCores split the grid.
    TB = min(_round_up(B, 8), block_b)
    padded_B = _round_up(B, TB)
    if padded_B != B:
        slab = jnp.pad(slab, ((0, padded_B - B), (0, 0)))
    grid = (padded_B // TB,)

    kernel = functools.partial(naf_kernel, state_size=state_size,
                               action_size=action_size, n_tril=n_tril)
    vmem = pltpu.MemorySpace.VMEM
    cost = pl.CostEstimate(
        flops=2 * padded_B * (IN_LANES * HP + HP * HP + HP * OUT_LANES),
        transcendentals=padded_B * (action_size + n_tril + 2 * action_size),
        bytes_accessed=(slab.size * 4 + w1.size * 2 + w2.size * 2 + wh.size * 2
                        + padded_B * OUT_LANES * 4),
    )

    out = pl.pallas_call(
        kernel,
        grid=grid,
        in_specs=[
            pl.BlockSpec((TB, IN_LANES), lambda i: (i, 0), memory_space=vmem),
            pl.BlockSpec((IN_LANES, HP), lambda i: (0, 0), memory_space=vmem),   # resident weights
            pl.BlockSpec((HP, HP), lambda i: (0, 0), memory_space=vmem),
            pl.BlockSpec((HP, OUT_LANES), lambda i: (0, 0), memory_space=vmem),
        ],
        out_specs=pl.BlockSpec((TB, OUT_LANES), lambda i: (i, 0), memory_space=vmem),
        out_shape=jax.ShapeDtypeStruct((padded_B, OUT_LANES), jnp.float32),
        compiler_params=pltpu.CompilerParams(dimension_semantics=("parallel",)),
        cost_estimate=cost,
    )(slab, w1, w2, wh)
    return out[:B]


@functools.partial(jax.jit, static_argnames=("state_size", "action_size",
                                             "n_tril", "with_action", "block_b"))
def naf_forward(params, input_, eps, action, *, state_size, action_size, n_tril,
                with_action=True, block_b=512):
    """Reproduces NAF.forward(input_, action). Returns (sampled_action, Q, V)."""
    A, T = action_size, n_tril
    slab = pack_slab(input_, action, eps, state_size, A)
    out = naf_pallas_call(slab, params, state_size=state_size, action_size=A,
                          n_tril=T, block_b=block_b)
    V = out[:, A + T:A + T + 1]
    Q = out[:, A + T + 1:A + T + 2] if with_action else None
    sampled = out[:, A + T + 2:A + T + 2 + A]
    return sampled, Q, V


def naf_apply(params, input_, sample_key, action=None, *, state_size, action_size, n_tril):
    # TODO(synk): sampling uses JAX PRNG, so it cannot be bitwise-identical to
    # torch's RNG stream; the sampling distribution itself matches.
    B = input_.shape[0]
    eps = jax.random.normal(sample_key, (B, action_size), dtype=jnp.float32)
    act_in = action if action is not None else jnp.zeros((B, action_size), jnp.float32)
    return naf_forward(params, input_, eps, act_in, state_size=state_size,
                       action_size=action_size, n_tril=n_tril,
                       with_action=action is not None)


# -------------------------- parameter construction ------------------------

def init_linear(key, fan_in, fan_out):
    """PyTorch nn.Linear default init: U(-1/sqrt(fan_in), 1/sqrt(fan_in))."""
    kw, kb = jax.random.split(key)
    bound = 1.0 / jnp.sqrt(float(fan_in))
    w = jax.random.uniform(kw, (fan_in, fan_out), jnp.float32, -bound, bound)
    b = jax.random.uniform(kb, (1, fan_out), jnp.float32, -bound, bound)
    return w, b


def make_params(key, state_size, action_size, layer_size):
    A = action_size
    T = A * (A + 1) // 2
    # Loud static failures instead of silent lane overwrites / leaks:
    assert A + T + 2 + A <= OUT_LANES, "fused output layout exceeds 128 lanes"
    assert state_size + 2 * A <= IN_LANES - 1, "packed input slab exceeds 128 lanes"

    keys = jax.random.split(key, 5)
    w1, b1 = init_linear(keys[0], state_size, layer_size)
    w2, b2 = init_linear(keys[1], layer_size, layer_size)
    wa, ba = init_linear(keys[2], layer_size, A)
    wv, bv = init_linear(keys[3], layer_size, 1)
    we, be = init_linear(keys[4], layer_size, T)

    HP = _round_up(layer_size + 1, 8)      # hidden width + constant-1 bias column
    BIAS_COL = layer_size

    # head_1: consumes the 128-lane slab directly; action/eps lanes hit zero rows;
    # b1 lives on the slab's constant-1 bias lane; one column reproduces the 1.
    w1_aug = jnp.zeros((IN_LANES, HP), jnp.float32)
    w1_aug = w1_aug.at[:state_size, :layer_size].set(w1)
    w1_aug = w1_aug.at[BIAS_LANE, :layer_size].set(b1[0])
    w1_aug = w1_aug.at[BIAS_LANE, BIAS_COL].set(1.0)

    # ff_1: b2 folded via the constant-1 hidden column, which it also re-emits.
    w2_aug = jnp.zeros((HP, HP), jnp.float32)
    w2_aug = w2_aug.at[:layer_size, :layer_size].set(w2)
    w2_aug = w2_aug.at[BIAS_COL, :layer_size].set(b2[0])
    w2_aug = w2_aug.at[BIAS_COL, BIAS_COL].set(1.0)

    # fused heads: [action_values | matrix_entries | value | 0-pad] (128 lanes, v5e-friendly)
    wh = jnp.concatenate([wa, we, wv], axis=1)            # (L, A+T+1)
    bh = jnp.concatenate([ba, be, bv], axis=1)            # (1, A+T+1)
    wh_aug = jnp.zeros((HP, OUT_LANES), jnp.float32)
    wh_aug = wh_aug.at[:layer_size, :A + T + 1].set(wh)
    wh_aug = wh_aug.at[BIAS_COL, :A + T + 1].set(bh[0])

    params = {"w1": w1_aug.astype(jnp.bfloat16),
              "w2": w2_aug.astype(jnp.bfloat16),
              "wh": wh_aug.astype(jnp.bfloat16)}
    raw = {"w1": w1, "b1": b1, "w2": w2, "b2": b2,
           "wa": wa, "ba": ba, "we": we, "be": be, "wv": wv, "bv": bv}
    return params, raw


# --------------------------- pure-JAX reference ----------------------------

def naf_reference(raw, input_, eps, action):
    """Direct reproduction of the PyTorch forward (tril fill, elementwise P,
    inverse, cholesky), precision-matched to the kernel's bf16 matmul operands."""
    q16 = lambda a: a.astype(jnp.bfloat16).astype(jnp.float32)
    hi = jax.lax.Precision.HIGHEST
    h1 = jax.nn.relu(jnp.dot(q16(input_), q16(raw["w1"]), precision=hi) + q16(raw["b1"]))
    h2 = jax.nn.relu(jnp.dot(q16(h1), q16(raw["w2"]), precision=hi) + q16(raw["b2"]))
    mu = jnp.tanh(jnp.dot(q16(h2), q16(raw["wa"]), precision=hi) + q16(raw["ba"]))
    entries = jnp.tanh(jnp.dot(q16(h2), q16(raw["we"]), precision=hi) + q16(raw["be"]))
    V = jnp.dot(q16(h2), q16(raw["wv"]), precision=hi) + q16(raw["bv"])

    B, A = mu.shape
    r, c = jnp.tril_indices(A)
    L = jnp.zeros((B, A, A), jnp.float32).at[:, r, c].set(entries)
    di = jnp.arange(A)
    L = L.at[:, di, di].set(jnp.exp(L[:, di, di]))
    P = L * jnp.swapaxes(L, 1, 2)   # elementwise, exactly as the torch module writes it

    dvec = (action - mu)[..., None]
    Q = (-0.5 * jnp.matmul(jnp.matmul(jnp.swapaxes(dvec, 1, 2), P), dvec))[..., 0] + V

    cov = jnp.linalg.inv(P)
    chol = jnp.linalg.cholesky(cov)
    sampled = jnp.clip(mu + jnp.einsum("bij,bj->bi", chol, eps), -1.0, 1.0)
    return sampled, Q, V


# --------------------------------- main -----------------------------------

if __name__ == "__main__":
    # LunarLanderContinuous-like sizes: state=8, action=2, hidden=32, batch=8
    STATE_SIZE, ACTION_SIZE, LAYER_SIZE, BATCH = 8, 2, 32, 8
    N_TRIL = ACTION_SIZE * (ACTION_SIZE + 1) // 2

    root = jax.random.PRNGKey(0)
    k_params, k_x, k_act, k_sample = jax.random.split(root, 4)

    params, raw = make_params(k_params, STATE_SIZE, ACTION_SIZE, LAYER_SIZE)
    x = jax.random.normal(k_x, (BATCH, STATE_SIZE), dtype=jnp.float32)
    action_in = jax.random.uniform(k_act, (BATCH, ACTION_SIZE), jnp.float32, -1.0, 1.0)
    eps = jax.random.normal(k_sample, (BATCH, ACTION_SIZE), dtype=jnp.float32)

    sampled, Q, V = naf_forward(params, x, eps, action_in,
                                state_size=STATE_SIZE, action_size=ACTION_SIZE,
                                n_tril=N_TRIL, with_action=True)
    jax.block_until_ready((sampled, Q, V))

    assert sampled.shape == (BATCH, ACTION_SIZE)
    assert Q.shape == (BATCH, 1)
    assert V.shape == (BATCH, 1)

    # correctness check vs. pure-JAX reproduction of the PyTorch forward
    # (the random lower-triangular entry is nonzero, so the elementwise-P
    #  assumption behind the closed form is exercised by this test)
    s_ref, q_ref, v_ref = naf_reference(raw, x, eps, action_in)
    assert jnp.allclose(V, v_ref, atol=1e-3, rtol=1e-3), "V mismatch"
    assert jnp.allclose(Q, q_ref, atol=1e-3, rtol=1e-3), "Q mismatch"
    # looser tolerance on the sample path: kernel uses the EUP approx reciprocal
    assert jnp.allclose(sampled, s_ref, atol=1e-2, rtol=1e-2), "sampled action mismatch"

    print("KERNEL_OK")
</pallas_src>

<mosaic_0001>
module attributes {stable_mosaic.version = 11 : i64} {
  func.func @naf_kernel(%arg0: i32, %arg1: memref<8x128xf32, #tpu.memory_space<vmem>>, %arg2: memref<128x40xbf16, #tpu.memory_space<vmem>>, %arg3: memref<40x40xbf16, #tpu.memory_space<vmem>>, %arg4: memref<40x128xbf16, #tpu.memory_space<vmem>>, %arg5: memref<8x128xf32, #tpu.memory_space<vmem>>) attributes {dimension_semantics = [#tpu.dimension_semantics<parallel>], iteration_bounds = array<i64: 1>, scalar_prefetch = 0 : i64, scratch_operands = 0 : i64, tpu.core_type = #tpu.core_type<tc>, window_params = [{transform_indices = @transform_0, window_bounds = array<i64: 8, 128>}, {pipeline_mode = #tpu.pipeline_mode<synchronous>, transform_indices = @transform_1, window_bounds = array<i64: 128, 40>}, {pipeline_mode = #tpu.pipeline_mode<synchronous>, transform_indices = @transform_2, window_bounds = array<i64: 40, 40>}, {pipeline_mode = #tpu.pipeline_mode<synchronous>, transform_indices = @transform_3, window_bounds = array<i64: 40, 128>}, {transform_indices = @transform_4, window_bounds = array<i64: 8, 128>}]} {
    %c0 = arith.constant 0 : index
    %c0_0 = arith.constant 0 : index
    %0 = vector.load %arg1[%c0, %c0_0] : memref<8x128xf32, #tpu.memory_space<vmem>>, vector<8x128xf32>
    %1 = arith.truncf %0 : vector<8x128xf32> to vector<8x128xbf16>
    %c0_1 = arith.constant 0 : index
    %c0_2 = arith.constant 0 : index
    %2 = vector.load %arg2[%c0_1, %c0_2] : memref<128x40xbf16, #tpu.memory_space<vmem>>, vector<128x40xbf16>
    %cst = arith.constant dense<0.000000e+00> : vector<8x40xf32>
    %3 = tpu.matmul %1, %2, %cst {dimension_numbers = #tpu.dot_dimension_numbers<[1], [0], [0], [1], [0, 0, 1, 1], [], []>} : vector<8x128xbf16>, vector<128x40xbf16>, vector<8x40xf32> -> vector<8x40xf32>
    %cst_3 = arith.constant 0.000000e+00 : f32
    %4 = vector.broadcast %cst_3 : f32 to vector<8x40xf32>
    %5 = arith.maximumf %3, %4 : vector<8x40xf32>
    %6 = arith.truncf %5 : vector<8x40xf32> to vector<8x40xbf16>
    %c0_4 = arith.constant 0 : index
    %c0_5 = arith.constant 0 : index
    %7 = vector.load %arg3[%c0_4, %c0_5] : memref<40x40xbf16, #tpu.memory_space<vmem>>, vector<40x40xbf16>
    %cst_6 = arith.constant dense<0.000000e+00> : vector<8x40xf32>
    %8 = tpu.matmul %6, %7, %cst_6 {dimension_numbers = #tpu.dot_dimension_numbers<[1], [0], [0], [1], [0, 0, 1, 1], [], []>} : vector<8x40xbf16>, vector<40x40xbf16>, vector<8x40xf32> -> vector<8x40xf32>
    %cst_7 = arith.constant 0.000000e+00 : f32
    %9 = vector.broadcast %cst_7 : f32 to vector<8x40xf32>
    %10 = arith.maximumf %8, %9 : vector<8x40xf32>
    %11 = arith.truncf %10 : vector<8x40xf32> to vector<8x40xbf16>
    %c0_8 = arith.constant 0 : index
    %c0_9 = arith.constant 0 : index
    %12 = vector.load %arg4[%c0_8, %c0_9] : memref<40x128xbf16, #tpu.memory_space<vmem>>, vector<40x128xbf16>
    %cst_10 = arith.constant dense<0.000000e+00> : vector<8x128xf32>
    %13 = tpu.matmul %11, %12, %cst_10 {dimension_numbers = #tpu.dot_dimension_numbers<[1], [0], [0], [1], [0, 0, 1, 1], [], []>} : vector<8x40xbf16>, vector<40x128xbf16>, vector<8x128xf32> -> vector<8x128xf32>
    %14 = tpu.iota {dimensions = array<i32: 1>} : vector<8x128xi32>
    %c5_i32 = arith.constant 5 : i32
    %15 = vector.broadcast %c5_i32 : i32 to vector<8x128xi32>
    %16 = arith.cmpi slt, %14, %15 : vector<8x128xi32>
    %17 = math.tanh %13 : vector<8x128xf32>
    %18 = arith.select %16, %17, %13 : vector<8x128xi1>, vector<8x128xf32>
    %19 = vector.extract_strided_slice %18 {offsets = [0, 5], sizes = [8, 1], strides = [1, 1]} : vector<8x128xf32> to vector<8x1xf32>
    %cst_11 = arith.constant 0.000000e+00 : f32
    %20 = vector.broadcast %cst_11 : f32 to vector<8x1xf32>
    %21 = vector.extract_strided_slice %18 {offsets = [0, 2], sizes = [8, 1], strides = [1, 1]} : vector<8x128xf32> to vector<8x1xf32>
    %22 = vector.extract_strided_slice %18 {offsets = [0, 0], sizes = [8, 1], strides = [1, 1]} : vector<8x128xf32> to vector<8x1xf32>
    %23 = math.exp %21 : vector<8x1xf32>
    %24 = vector.extract_strided_slice %0 {offsets = [0, 8], sizes = [8, 1], strides = [1, 1]} : vector<8x128xf32> to vector<8x1xf32>
    %25 = arith.subf %24, %22 : vector<8x1xf32>
    %26 = arith.mulf %23, %23 : vector<8x1xf32>
    %27 = arith.mulf %25, %25 : vector<8x1xf32>
    %28 = arith.mulf %26, %27 : vector<8x1xf32>
    %29 = arith.addf %20, %28 : vector<8x1xf32>
    %30 = vector.extract_strided_slice %0 {offsets = [0, 10], sizes = [8, 1], strides = [1, 1]} : vector<8x128xf32> to vector<8x1xf32>
    %31 = tpu.reciprocal %23 {approx = true} : vector<8x1xf32> -> vector<8x1xf32>
    %32 = arith.mulf %30, %31 : vector<8x1xf32>
    %33 = arith.addf %22, %32 : vector<8x1xf32>
    %cst_12 = arith.constant -1.000000e+00 : f32
    %cst_13 = arith.constant 1.000000e+00 : f32
    %34 = vector.broadcast %cst_12 : f32 to vector<8x1xf32>
    %35 = arith.maximumf %34, %33 : vector<8x1xf32>
    %36 = vector.broadcast %cst_13 : f32 to vector<8x1xf32>
    %37 = arith.minimumf %36, %35 : vector<8x1xf32>
    %38 = vector.extract_strided_slice %18 {offsets = [0, 4], sizes = [8, 1], strides = [1, 1]} : vector<8x128xf32> to vector<8x1xf32>
    %39 = vector.extract_strided_slice %18 {offsets = [0, 1], sizes = [8, 1], strides = [1, 1]} : vector<8x128xf32> to vector<8x1xf32>
    %40 = math.exp %38 : vector<8x1xf32>
    %41 = vector.extract_strided_slice %0 {offsets = [0, 9], sizes = [8, 1], strides = [1, 1]} : vector<8x128xf32> to vector<8x1xf32>
    %42 = arith.subf %41, %39 : vector<8x1xf32>
    %43 = arith.mulf %40, %40 : vector<8x1xf32>
    %44 = arith.mulf %42, %42 : vector<8x1xf32>
    %45 = arith.mulf %43, %44 : vector<8x1xf32>
    %46 = arith.addf %29, %45 : vector<8x1xf32>
    %47 = vector.extract_strided_slice %0 {offsets = [0, 11], sizes = [8, 1], strides = [1, 1]} : vector<8x128xf32> to vector<8x1xf32>
    %48 = tpu.reciprocal %40 {approx = true} : vector<8x1xf32> -> vector<8x1xf32>
    %49 = arith.mulf %47, %48 : vector<8x1xf32>
    %50 = arith.addf %39, %49 : vector<8x1xf32>
    %cst_14 = arith.constant -1.000000e+00 : f32
    %cst_15 = arith.constant 1.000000e+00 : f32
    %51 = vector.broadcast %cst_14 : f32 to vector<8x1xf32>
    %52 = arith.maximumf %51, %50 : vector<8x1xf32>
    %53 = vector.broadcast %cst_15 : f32 to vector<8x1xf32>
    %54 = arith.minimumf %53, %52 : vector<8x1xf32>
    %cst_16 = arith.constant -5.000000e-01 : f32
    %55 = vector.broadcast %cst_16 : f32 to vector<8x1xf32>
    %56 = arith.mulf %55, %46 : vector<8x1xf32>
    %57 = arith.addf %56, %19 : vector<8x1xf32>
    %c6_i32 = arith.constant 6 : i32
    %58 = vector.broadcast %c6_i32 : i32 to vector<8x128xi32>
    %59 = arith.cmpi slt, %14, %58 : vector<8x128xi32>
    %cst_17 = arith.constant 0.000000e+00 : f32
    %60 = vector.broadcast %cst_17 : f32 to vector<8x128xf32>
    %61 = arith.select %59, %18, %60 : vector<8x128xi1>, vector<8x128xf32>
    %c6_i32_18 = arith.constant 6 : i32
    %62 = vector.broadcast %c6_i32_18 : i32 to vector<8x128xi32>
    %63 = arith.cmpi eq, %14, %62 : vector<8x128xi32>
    %64 = vector.shape_cast %57 : vector<8x1xf32> to vector<8x1xf32>
    %65 = vector.broadcast %64 : vector<8x1xf32> to vector<8x128xf32>
    %66 = arith.select %63, %65, %61 : vector<8x128xi1>, vector<8x128xf32>
    %c7_i32 = arith.constant 7 : i32
    %67 = vector.broadcast %c7_i32 : i32 to vector<8x128xi32>
    %68 = arith.cmpi eq, %14, %67 : vector<8x128xi32>
    %69 = vector.shape_cast %37 : vector<8x1xf32> to vector<8x1xf32>
    %70 = vector.broadcast %69 : vector<8x1xf32> to vector<8x128xf32>
    %71 = arith.select %68, %70, %66 : vector<8x128xi1>, vector<8x128xf32>
    %c8_i32 = arith.constant 8 : i32
    %72 = vector.broadcast %c8_i32 : i32 to vector<8x128xi32>
    %73 = arith.cmpi eq, %14, %72 : vector<8x128xi32>
    %74 = vector.shape_cast %54 : vector<8x1xf32> to vector<8x1xf32>
    %75 = vector.broadcast %74 : vector<8x1xf32> to vector<8x128xf32>
    %76 = arith.select %73, %75, %71 : vector<8x128xi1>, vector<8x128xf32>
    %c0_19 = arith.constant 0 : index
    %c0_20 = arith.constant 0 : index
    %77 = vector.load %arg5[%c0_19, %c0_20] : memref<8x128xf32, #tpu.memory_space<vmem>>, vector<8x128xf32>
    tpu.vector_store %arg5[%c0_19, %c0_20], %76 {strides = array<i32>} : memref<8x128xf32, #tpu.memory_space<vmem>>, vector<8x128xf32>,
    return
  }
  func.func @transform_0(%arg0: i32) -> (i32, i32) {
    %c0_i32 = arith.constant 0 : i32
    %c0_i32_0 = arith.constant 0 : i32
    return %arg0, %c0_i32 : i32, i32
  }
  func.func @transform_1(%arg0: i32) -> (i32, i32) {
    %c0_i32 = arith.constant 0 : i32
    %c0_i32_0 = arith.constant 0 : i32
    %c0_i32_1 = arith.constant 0 : i32
    return %c0_i32, %c0_i32_0 : i32, i32
  }
  func.func @transform_2(%arg0: i32) -> (i32, i32) {
    %c0_i32 = arith.constant 0 : i32
    %c0_i32_0 = arith.constant 0 : i32
    %c0_i32_1 = arith.constant 0 : i32
    return %c0_i32, %c0_i32_0 : i32, i32
  }
  func.func @transform_3(%arg0: i32) -> (i32, i32) {
    %c0_i32 = arith.constant 0 : i32
    %c0_i32_0 = arith.constant 0 : i32
    %c0_i32_1 = arith.constant 0 : i32
    return %c0_i32, %c0_i32_0 : i32, i32
  }
  func.func @transform_4(%arg0: i32) -> (i32, i32) {
    %c0_i32 = arith.constant 0 : i32
    %c0_i32_0 = arith.constant 0 : i32
    return %arg0, %c0_i32 : i32, i32
  }
}

</mosaic_0001>

<bundles_post_ra>
// kernel: naf_forward.1
= control target key start
LH: loop header
LB: loop body
LE: loop exit
PB: predicated region body
PF: predicated region fallthrough
CT: control target
= control target key end

     0   :  { %v459_v0 = vmov 0.0   ;;  %vm460_vm0 = vmmov 0   ;;  %vm150_vm1 = vcmask 1043456   ;;  %vm146_vm2 = vcmask 326656   ;;  %s462_s16 = smov 7   ;;  %s463_s17 = smov 123   ;;  %s565_s1 = inlined_call_operand.vmem [shape: bf16[128,40], index: 1, kind: input, shape index: {}]   ;;  %s566_s2 = inlined_call_operand.vmem [shape: bf16[40,40], index: 2, kind: input, shape index: {}]   ;;  %s567_s3 = inlined_call_operand.vmem [shape: bf16[40,128], index: 3, kind: input, shape index: {}]   ;;  %s568_s0 = inlined_call_operand.vmem [shape: f32[8,128], index: 0, kind: input, shape index: {}]   ;;  %s569_s4 = inlined_call_operand.vmem [shape: f32[8,128], index: 4, kind: output, shape index: {}]  }
   0x1   :  { %383 = vmatprep.subr.bf16.mxu0 %v459_v0  ;;  %v439_v1 = vld [vmem:[%s565_s1 + $0x38] sm:$0xff]   ;;  %399 = vmatprep.mubr.msk.bf16.mxu0 %vm460_vm0, %v459_v0  ;;  %v440_v2 = vld [vmem:[%s565_s1 + $0x30] sm:$0xff]   ;;  %v441_v3 = vld [vmem:[%s565_s1 + $0x28] sm:$0xff]   ;;  %v262_v33 = vlaneseq  ;;  %s464_s18 = smov 122   ;;  %v465_v45 = vmov 0   ;;  %s466_s19 = smov 118  }
   0x2   :  { %403 = vmatprep.subr.bf16.mxu1 %v459_v0  ;;  %409 = vmatprep.mubr.msk.bf16.mxu1 %vm460_vm0, %v459_v0  ;;  %v447_v4 = vld [vmem:[%s566_s2 + $0x10] ss:$0 sps:$4 sm:$0xff]   ;;  %v442_v5 = vld [vmem:[%s565_s1 + $0x20] sm:$0xff]   ;;  %v449_v7 = vld [vmem:[%s566_s2 + $0x8] sm:$0xff]   ;;  %s467_s20 = smov 125   ;;  %v468_v48 = vmov 2  }
   0x3   :  { %384 = vmatpush3.bf16.msra.mxu0 %v439_v1  ;;  %v152_v6 = vsel %vm150_vm1, %v447_v4, 0  ;;  %v443_v8 = vld [vmem:[%s565_s1 + $0x18] sm:$0xff]   ;;  %v444_v9 = vld [vmem:[%s565_s1 + $0x10] sm:$0xff]   ;;  %v445_v10 = vld [vmem:[%s565_s1 + $0x8] sm:$0xff]   ;;  %v552_v36 = vand.u32 127, %v262_v33  ;;  %436 = vset.pattern.permute.xlu0 %v465_v45  ;;  %s469_s21 = smov 126  }
   0x4   :  { %385 = vmatprep.subr.bf16.mxu0 %v459_v0  ;;  %404 = vmatpush3.bf16.msra.mxu1 %v152_v6  ;;  %v446_v11 = vld [vmem:[%s565_s1] sm:$0xff]   ;;  %v448_v15 = vld [vmem:[%s567_s3 + $0x10] ss:$0 sps:$4 sm:$0xff]   ;;  %v451_v23 = vld [vmem:[%s567_s3 + $0x8] sm:$0xff]   ;;  %v470_v59 = vmov 1  }
   0x5   :  { %405 = vmatprep.subr.bf16.mxu1 %v459_v0  ;;  %v532_v12 = vld [vmem:[%s568_s0] sm:$0xff]  ;;  %v220_v19 = vsel %vm150_vm1, %v448_v15, 0  ;;  %vm264_vm3 = vcmp.lt.s32.totalorder %v552_v36, 5  ;;  %435 = vset.pattern.permute.xlu1 %v468_v48  ;;  %vm320_vm4 = vcmp.lt.s32.totalorder %v552_v36, 6  ;;  %vm322_vm5 = vcmp.eq.s32.totalorder %v552_v36, 6 }
   0x6   :  { %v19_v13 = vpack.c.bf16 %v532_v12, %v532_v12  ;;  %v450_v14 = vld [vmem:[%s566_s2] sm:$0xff]   ;;  %vm329_vm6 = vcmp.eq.s32.totalorder %v552_v36, 7  ;;  %vm336_vm7 = vcmp.eq.s32.totalorder %v552_v36, 8 }
   0x7   :  { %386 = vmatpush3.bf16.msra.mxu0 %v440_v2  ;;  %v452_v24 = vld [vmem:[%s567_s3] sm:$0xff]   ;;  %s461_s3 = smov 8  }
   0x8   :  { %387 = vmatprep.subr.bf16.mxu0 %v459_v0  ;;  %406 = vmatpush3.bf16.msra.mxu1 %v449_v7 }
   0x9   :  { %407 = vmatprep.subr.bf16.mxu1 %v459_v0 }
   0xb   :  { %388 = vmatpush3.bf16.msra.mxu0 %v441_v3 }
   0xc   :  { %389 = vmatprep.subr.bf16.mxu0 %v459_v0  ;;  %408 = vmatpush3.bf16.msra.mxu1 %v450_v14 }
   0xd   :  { %413 = vmatprep.subr.bf16.mxu1 %v459_v0 }
   0xf   :  { %390 = vmatpush3.bf16.msra.mxu0 %v442_v5 }
  0x10   :  { %391 = vmatprep.subr.bf16.mxu0 %v459_v0 }
  0x13   :  { %392 = vmatpush3.bf16.msra.mxu0 %v443_v8 }
  0x14   :  { %393 = vmatprep.subr.bf16.mxu0 %v459_v0 }
  0x17   :  { %394 = vmatpush3.bf16.msra.mxu0 %v444_v9 }
  0x18   :  { %395 = vmatprep.subr.bf16.mxu0 %v459_v0 }
  0x1b   :  { %396 = vmatpush3.bf16.msra.mxu0 %v445_v10 }
  0x1c   :  { %397 = vmatprep.subr.bf16.mxu0 %v459_v0 }
  0x1f   :  { %398 = vmatpush3.bf16.msra.mxu0 %v446_v11 }
  0x22   :  { %400 = vmatmul.mubr.bf16.vlgmr.msra.gmra.mxu0 %v19_v13 }
  0xe2   :  { %v118_v16 = vpop.f32.mrf.mxu0 }
  0xe3   :  { %v124_v17 = vmax.f32 %v118_v16, 0.0 }
  0xe4   :  { %v401_v18 = vpop.f32.mrf.mxu0 }
  0xe5   :  { %v125_v20 = vpack.c.bf16 %v124_v17, %v124_v17 }
  0xe6   :  { %v121_v21 = vpop.f32.mrf.mxu0 }
  0xe7   :  { %410 = vmatmul.mubr.msk.bf16.vlgmr.msra.gmra.mxu1 %vm146_vm2, %v125_v20 }
  0xe8   :  { %v402_v22 = vpop.f32.mrf.mxu0  ;;  %414 = vmatpush3.bf16.msra.mxu1 %v220_v19  ;;  %419 = vmatprep.mubr.msk.bf16.mxu1 %vm460_vm0, %v459_v0 }
  0xe9   :  { %415 = vmatprep.subr.bf16.mxu1 %v459_v0 }
  0xec   :  { %416 = vmatpush3.bf16.msra.mxu1 %v451_v23 }
  0xed   :  { %417 = vmatprep.subr.bf16.mxu1 %v459_v0 }
  0xf0   :  { %418 = vmatpush3.bf16.msra.mxu1 %v452_v24 }
 0x1a7   :  { %v188_v25 = vpop.f32.mrf.mxu1 }
 0x1a8   :  { %v194_v26 = vmax.f32 %v188_v25, 0.0 }
 0x1a9   :  { %v411_v27 = vpop.f32.mrf.mxu1 }
 0x1aa   :  { %v195_v28 = vpack.c.bf16 %v194_v26, %v194_v26 }
 0x1ab   :  { %v191_v29 = vpop.f32.mrf.mxu1 }
 0x1ac   :  { %420 = vmatmul.mubr.msk.bf16.vlgmr.msra.gmra.mxu1 %vm146_vm2, %v195_v28 }
 0x1ad   :  { %v412_v30 = vpop.f32.mrf.mxu1 }
 0x26c   :  { %v256_v31 = vpop.f32.mrf.mxu1 }
 0x26d   :  { %453 = vtanh.f32 %v256_v31 }
 0x26e   :  { %v421_v32 = vpop.f32.mrf.mxu1 }
 0x270   :  { %v259_v34 = vpop.f32.mrf.mxu1 }
 0x272   :  { %v422_v35 = vpop.f32.mrf.mxu1 }
 0x27a   :  { %v454_v37 = vpop.eup %453 }
 0x27b   :  { %v266_v38 = vsel %vm264_vm3, %v454_v37, %v256_v31 }
 0x27c   :  { %v267_v39 = vmul.f32 1.442695, %v266_v38  ;;  %270 = vrot.lane.b32.xlu0 %v266_v38, %s461_s3  ;;  %v321_v5 = vsel %vm320_vm4, %v266_v38, 0.0 }
 0x27e   :  { %455 = vpow2.f32 %v267_v39 }
 0x28b   :  { %v456_v40 = vpop.eup %455 }
 0x28c   :  { %457 = vrcp.f32 %v456_v40  ;;  %v274_v49 = vmul.f32 %v456_v40, %v456_v40 }
 0x299   :  { %v458_v41 = vpop.eup %457 }
 0x29a   :  { %284 = vrot.lane.b32.xlu1 %v458_v41, %s461_s3 }
 0x29e   :  { %304 = vrot.lane.b32.xlu1 %v458_v41, %s462_s16 }
 0x2ee   :  { %v271_v42 = vpop.permute.xlu0 %270 }
 0x2ef   :  { %v273_v43 = vsub.f32 %v532_v12, %v271_v42 }
 0x2f1   :  { %v275_v44 = vmul.f32 %v273_v43, %v273_v43 }
 0x2f3   :  { %295 = vrot.lane.b32.xlu0 %v275_v44, %s463_s17 }
 0x2f7   :  { %277 = vrot.lane.b32.xlu0 %v275_v44, %s464_s18 }
 0x30c   :  { %v285_v46 = vpop.permute.xlu1 %284 }
 0x30d   :  { %v287_v47 = vmul.f32 %v285_v46, %v532_v12 }
 0x30f   :  { %289 = vrot.lane.b32.xlu0 %v287_v47, %s466_s19 }
 0x310   :  { %v305_v52 = vpop.permute.xlu1 %304 }
 0x311   :  { %v307_v54 = vmul.f32 %v305_v52, %v532_v12 }
 0x313   :  { %316 = vrot.lane.b32.xlu0 %v266_v38, %s467_s20 }
 0x365   :  { %v296_v50 = vpop.permute.xlu0 %295 }
 0x366   :  { %v298_v51 = vmul.f32 %v296_v50, %v274_v49 }
 0x368   :  { %300 = vrot.lane.b32.xlu1 %v298_v51, %s469_s21 }
 0x369   :  { %v278_v53 = vpop.permute.xlu0 %277 }
 0x36a   :  { %v280_v55 = vmul.f32 %v278_v53, %v274_v49 }
 0x36c   :  { %309 = vrot.lane.b32.xlu1 %v307_v54, %s466_s19 }
 0x381   :  { %v290_v56 = vpop.permute.xlu0 %289 }
 0x382   :  { %v292_v57 = vadd.f32 %v290_v56, %v266_v38 }
 0x384   :  { %v364_v58 = vclamps-f32 %v292_v57, 1.0 }
 0x385   :  { %v317_v63 = vpop.permute.xlu0 %316 }
 0x386   :  { %332 = vperm.xlu0 %436, %v364_v58  }
 0x38a   :  { %438 = vset.pattern.permute.xlu0 %v470_v59 }
 0x3da   :  { %v301_v60 = vpop.permute.xlu1 %300 }
 0x3db   :  { %v303_v61 = vadd.f32 %v301_v60, %v280_v55 }
 0x3dd   :  { %v315_v62 = vmul.f32 -0.5, %v303_v61 }
 0x3de   :  { %v310_v0 = vpop.permute.xlu1 %309 }
 0x3df   :  { %v319_v1 = vadd.f32 %v317_v63, %v315_v62  ;;  %v312_v2 = vadd.f32 %v310_v0, %v266_v38 }
 0x3e1   :  { %325 = vperm.xlu1 %435, %v319_v1   ;;  %v365_v3 = vclamps-f32 %v312_v2, 1.0 }
 0x3e5   :  { %437 = vset.pattern.permute.xlu1 %v470_v59 }
 0x3e6   :  { %339 = vperm.xlu1 %437, %v365_v3  }
 0x401   :  { %v333_v7 = vpop.permute.xlu0 %332 }
 0x45c   :  { %v326_v4 = vpop.permute.xlu1 %325 }
 0x45d   :  { %v328_v6 = vsel %vm322_vm5, %v326_v4, %v321_v5 }
 0x45e   :  { %v335_v8 = vsel %vm329_vm6, %v333_v7, %v328_v6 }
 0x461   :  { %v340_v9 = vpop.permute.xlu1 %339 }
 0x462   :  { %v342_v10 = vsel %vm336_vm7, %v340_v9, %v335_v8 }
 0x463   :  { %343 = vst [vmem:[%s569_s4] sm:$0xff] %v342_v10 }

</bundles_post_ra>
